<compile_context>
chip_gen: v7x
topology: tpu7x:2x2x1
jax: 0.10.0
libtpu: 0.0.40
codegen_flags: <defaults>
</compile_context>

<pallas_src>
import functools

import jax
import jax.numpy as jnp
from jax.experimental import pallas as pl
from jax.experimental.pallas import tpu as pltpu


EDGE_ALPHA = 0.8
GAMMA = 2.0
LANES = 128
SUBLANES = 8
MAX_ROW_BLOCK = 4096   # rows per block: 2 MiB f32/input block -> flat roofline


def _round_up(x, m):
    return -(-x // m) * m


def _focal_loss_kernel(pred_ref, target_ref, out_ref, acc_ref, *,
                       edge_alpha, gamma, inv_count, total, row_block,
                       need_mask):
    step = pl.program_id(0)

    @pl.when(step == 0)
    def _():
        acc_ref[...] = jnp.zeros_like(acc_ref)

    x = pred_ref[...].astype(jnp.float32)
    t = target_ref[...].astype(jnp.float32)

    # Numerically stable BCE-with-logits (== F.binary_cross_entropy_with_logits):
    #   bce = max(x, 0) - x*t + log(1 + exp(-|x|))
    e = jnp.exp(-jnp.abs(x))                     # reused below: one exp/element
    bce = jnp.maximum(x, 0.0) - x * t + jnp.log1p(e)

    # pt = exp(-bce).  For the 0/1 masks this loss is designed for (the module
    # itself branches on `target == 0`), pt == sigmoid(x) when t==1 and
    # 1 - sigmoid(x) when t==0, so the modulating factor m = 1 - pt is
    # recovered from the already-computed e with one exact reciprocal instead
    # of another EUP exp.  (approx=True reciprocal risks the 1-pt cancellation
    # tolerance, so keep it exact.)
    s = jnp.where(x >= 0.0, 1.0, e) * pl.reciprocal(1.0 + e, approx=False)
    m = jnp.where(t == 0.0, s, 1.0 - s)          # m = 1 - pt, no cancellation
    if float(gamma) == 2.0:                      # avoid float pow (exp+log)
        mod = m * m
    else:
        mod = m ** gamma

    # Select only the alpha weight (saves two full-tile muls vs. two products).
    w = jnp.where(t == 0.0, edge_alpha, 1.0 - edge_alpha)
    contrib = w * mod * bce

    if need_mask:
        # Zero out wrapper-pad elements and Pallas boundary-block padding.
        row_ids = (jax.lax.broadcasted_iota(jnp.int32, contrib.shape, 0)
                   + step * row_block)
        lane_ids = jax.lax.broadcasted_iota(jnp.int32, contrib.shape, 1)
        full_rows = total // LANES
        rem = total % LANES
        in_bounds = (row_ids < full_rows) | ((row_ids == full_rows)
                                             & (lane_ids < rem))
        contrib = jnp.where(in_bounds, contrib, 0.0)

    # Single-vreg accumulator: fold the block onto 8 sublanes with pure VPU
    # adds (sublane-contiguous reshape -> vreg-to-vreg sums, no XLU).
    acc_ref[...] += jnp.sum(contrib.reshape(-1, SUBLANES, LANES), axis=0)

    @pl.when(step == pl.num_programs(0) - 1)
    def _():
        # Single cross-sublane reduce in the epilogue; lane partials are scaled
        # by 1/numel so the wrapper only sums 128 floats.
        out_ref[...] = jnp.sum(acc_ref[...], axis=0, keepdims=True) * inv_count


def focal_loss(pred, target, edge_alpha=EDGE_ALPHA, gamma=GAMMA):
    assert pred.shape == target.shape
    total = int(pred.size)

    pred_flat = pred.reshape(-1)
    target_flat = target.reshape(-1)   # read in caller dtype, no cast pass

    # Sublane multiple required by the narrower input dtype (f32:8, bf16:16, i8:32).
    min_itemsize = min(pred_flat.dtype.itemsize, target_flat.dtype.itemsize)
    sub = {4: 8, 2: 16, 1: 32}.get(min_itemsize, 8)

    # Pad (only when needed) so the flat array reshapes to a lane-dense slab;
    # padded elements are masked inside the kernel.
    tile = sub * LANES
    padded_total = _round_up(total, tile)
    pad = padded_total - total
    if pad:
        pred_flat = jnp.pad(pred_flat, (0, pad))
        target_flat = jnp.pad(target_flat, (0, pad))

    rows = padded_total // LANES                       # multiple of `sub`
    row_block = min(MAX_ROW_BLOCK, rows)               # multiple of `sub` too
    steps = pl.cdiv(rows, row_block)
    need_mask = (steps * row_block * LANES != total)

    pred2d = pred_flat.reshape(rows, LANES)
    target2d = target_flat.reshape(rows, LANES)

    kernel = functools.partial(
        _focal_loss_kernel,
        edge_alpha=float(edge_alpha),
        gamma=float(gamma),
        inv_count=1.0 / float(total),
        total=total,
        row_block=row_block,
        need_mask=need_mask,
    )

    out = pl.pallas_call(
        kernel,
        out_shape=jax.ShapeDtypeStruct((1, LANES), jnp.float32),
        grid_spec=pltpu.PrefetchScalarGridSpec(
            num_scalar_prefetch=0,
            grid=(steps,),
            in_specs=[
                pl.BlockSpec((row_block, LANES), lambda i: (i, 0)),
                pl.BlockSpec((row_block, LANES), lambda i: (i, 0)),
            ],
            out_specs=pl.BlockSpec((1, LANES), lambda i: (0, 0)),
            scratch_shapes=[pltpu.VMEM((SUBLANES, LANES), jnp.float32)],
        ),
        compiler_params=pltpu.CompilerParams(
            dimension_semantics=("arbitrary",)),
    )(pred2d, target2d)

    return jnp.sum(out)


def _reference_focal_loss(pred, target, edge_alpha=EDGE_ALPHA, gamma=GAMMA):
    x = pred.astype(jnp.float32)
    t = target.astype(jnp.float32)
    bce = jnp.maximum(x, 0.0) - x * t + jnp.log1p(jnp.exp(-jnp.abs(x)))
    pt = jnp.exp(-bce)
    fl = jnp.where(t == 0.0,
                   edge_alpha * (1.0 - pt) ** gamma * bce,
                   (1.0 - edge_alpha) * (1.0 - pt) ** gamma * bce)
    return jnp.mean(fl)


if __name__ == "__main__":
    key = jax.random.PRNGKey(0)
    k1, k2 = jax.random.split(key)
    # NCHW, small shapes: batch=2, channels=4, spatial=16
    pred = jax.random.normal(k1, (2, 4, 16, 16), dtype=jnp.float32)
    target = (jax.random.uniform(k2, (2, 4, 16, 16)) > 0.5).astype(jnp.float32)

    loss = focal_loss(pred, target)
    loss = jax.block_until_ready(loss)

    ref = _reference_focal_loss(pred, target)
    assert jnp.allclose(loss, ref, rtol=1e-5, atol=1e-6), (loss, ref)
    print("KERNEL_OK")
</pallas_src>

<mosaic_0001>
module attributes {stable_mosaic.version = 11 : i64} {
  func.func @_focal_loss_kernel(%arg0: i32, %arg1: memref<16x128xf32, #tpu.memory_space<vmem>>, %arg2: memref<16x128xf32, #tpu.memory_space<vmem>>, %arg3: memref<1x128xf32, #tpu.memory_space<vmem>>, %arg4: memref<8x128xf32, #tpu.memory_space<vmem>>) attributes {dimension_semantics = [#tpu.dimension_semantics<arbitrary>], iteration_bounds = array<i64: 1>, scalar_prefetch = 0 : i64, scratch_operands = 1 : i64, tpu.core_type = #tpu.core_type<tc>, window_params = [{transform_indices = @transform_0, window_bounds = array<i64: 16, 128>}, {transform_indices = @transform_1, window_bounds = array<i64: 16, 128>}, {pipeline_mode = #tpu.pipeline_mode<synchronous>, transform_indices = @transform_2, window_bounds = array<i64: 1, 128>}]} {
    %c0_i32 = arith.constant 0 : i32
    %0 = arith.cmpi eq, %arg0, %c0_i32 : i32
    %1 = arith.extui %0 : i1 to i32
    %c0_i32_0 = arith.constant 0 : i32
    %2 = arith.cmpi ne, %1, %c0_i32_0 : i32
    scf.if %2 {
      %cst_20 = arith.constant 0.000000e+00 : f32
      %44 = vector.broadcast %cst_20 : f32 to vector<8x128xf32>
      %c0_21 = arith.constant 0 : index
      %c0_22 = arith.constant 0 : index
      %45 = vector.load %arg4[%c0_21, %c0_22] : memref<8x128xf32, #tpu.memory_space<vmem>>, vector<8x128xf32>
      tpu.vector_store %arg4[%c0_21, %c0_22], %44 {strides = array<i32>} : memref<8x128xf32, #tpu.memory_space<vmem>>, vector<8x128xf32>,
    } else {
    }
    %c0 = arith.constant 0 : index
    %c0_1 = arith.constant 0 : index
    %3 = vector.load %arg1[%c0, %c0_1] : memref<16x128xf32, #tpu.memory_space<vmem>>, vector<16x128xf32>
    %c0_2 = arith.constant 0 : index
    %c0_3 = arith.constant 0 : index
    %4 = vector.load %arg2[%c0_2, %c0_3] : memref<16x128xf32, #tpu.memory_space<vmem>>, vector<16x128xf32>
    %5 = math.absf %3 : vector<16x128xf32>
    %cst = arith.constant 0.000000e+00 : f32
    %6 = vector.broadcast %cst : f32 to vector<16x128xf32>
    %7 = arith.subf %6, %5 : vector<16x128xf32>
    %8 = math.exp %7 : vector<16x128xf32>
    %cst_4 = arith.constant 0.000000e+00 : f32
    %9 = vector.broadcast %cst_4 : f32 to vector<16x128xf32>
    %10 = arith.maximumf %3, %9 : vector<16x128xf32>
    %11 = arith.mulf %3, %4 : vector<16x128xf32>
    %12 = arith.subf %10, %11 : vector<16x128xf32>
    %13 = math.log1p %8 : vector<16x128xf32>
    %14 = arith.addf %12, %13 : vector<16x128xf32>
    %cst_5 = arith.constant 0.000000e+00 : f32
    %15 = vector.broadcast %cst_5 : f32 to vector<16x128xf32>
    %16 = arith.cmpf oge, %3, %15 : vector<16x128xf32>
    %cst_6 = arith.constant 1.000000e+00 : f32
    %17 = vector.broadcast %cst_6 : f32 to vector<16x128xf32>
    %18 = arith.select %16, %17, %8 : vector<16x128xi1>, vector<16x128xf32>
    %cst_7 = arith.constant 1.000000e+00 : f32
    %19 = vector.broadcast %cst_7 : f32 to vector<16x128xf32>
    %20 = arith.addf %19, %8 : vector<16x128xf32>
    %21 = tpu.reciprocal %20 : vector<16x128xf32> -> vector<16x128xf32>
    %22 = arith.mulf %18, %21 : vector<16x128xf32>
    %cst_8 = arith.constant 0.000000e+00 : f32
    %23 = vector.broadcast %cst_8 : f32 to vector<16x128xf32>
    %24 = arith.cmpf oeq, %4, %23 : vector<16x128xf32>
    %cst_9 = arith.constant 1.000000e+00 : f32
    %25 = vector.broadcast %cst_9 : f32 to vector<16x128xf32>
    %26 = arith.subf %25, %22 : vector<16x128xf32>
    %27 = arith.select %24, %22, %26 : vector<16x128xi1>, vector<16x128xf32>
    %28 = arith.mulf %27, %27 : vector<16x128xf32>
    %cst_10 = arith.constant 0.000000e+00 : f32
    %29 = vector.broadcast %cst_10 : f32 to vector<16x128xf32>
    %30 = arith.cmpf oeq, %4, %29 : vector<16x128xf32>
    %cst_11 = arith.constant 8.000000e-01 : f32
    %cst_12 = arith.constant 2.000000e-01 : f32
    %31 = vector.broadcast %cst_11 : f32 to vector<16x128xf32>
    %32 = vector.broadcast %cst_12 : f32 to vector<16x128xf32>
    %33 = arith.select %30, %31, %32 : vector<16x128xi1>, vector<16x128xf32>
    %34 = arith.mulf %33, %28 : vector<16x128xf32>
    %35 = arith.mulf %34, %14 : vector<16x128xf32>
    %c0_13 = arith.constant 0 : index
    %c0_14 = arith.constant 0 : index
    %36 = vector.load %arg4[%c0_13, %c0_14] : memref<8x128xf32, #tpu.memory_space<vmem>>, vector<8x128xf32>
    %37 = vector.shape_cast %35 : vector<16x128xf32> to vector<2x8x128xf32>
    %cst_15 = arith.constant dense<0.000000e+00> : vector<8x128xf32>
    %38 = vector.multi_reduction <add>, %37, %cst_15 [0] : vector<2x8x128xf32> to vector<8x128xf32>
    %39 = arith.addf %36, %38 : vector<8x128xf32>
    %c0_16 = arith.constant 0 : index
    %c0_17 = arith.constant 0 : index
    %40 = vector.load %arg4[%c0_16, %c0_17] : memref<8x128xf32, #tpu.memory_space<vmem>>, vector<8x128xf32>
    tpu.vector_store %arg4[%c0_16, %c0_17], %39 {strides = array<i32>} : memref<8x128xf32, #tpu.memory_space<vmem>>, vector<8x128xf32>,
    %c0_i32_18 = arith.constant 0 : i32
    %41 = arith.cmpi eq, %arg0, %c0_i32_18 : i32
    %42 = arith.extui %41 : i1 to i32
    %c0_i32_19 = arith.constant 0 : i32
    %43 = arith.cmpi ne, %42, %c0_i32_19 : i32
    scf.if %43 {
      %c0_20 = arith.constant 0 : index
      %c0_21 = arith.constant 0 : index
      %44 = vector.load %arg4[%c0_20, %c0_21] : memref<8x128xf32, #tpu.memory_space<vmem>>, vector<8x128xf32>
      %cst_22 = arith.constant dense<0.000000e+00> : vector<128xf32>
      %45 = vector.multi_reduction <add>, %44, %cst_22 [0] : vector<8x128xf32> to vector<128xf32>
      %46 = vector.shape_cast %45 : vector<128xf32> to vector<1x128xf32>
      %cst_23 = arith.constant 4.8828125E-4 : f32
      %47 = vector.broadcast %cst_23 : f32 to vector<1x128xf32>
      %48 = arith.mulf %46, %47 : vector<1x128xf32>
      %c0_24 = arith.constant 0 : index
      %c0_25 = arith.constant 0 : index
      %49 = vector.load %arg3[%c0_24, %c0_25] : memref<1x128xf32, #tpu.memory_space<vmem>>, vector<1x128xf32>
      tpu.vector_store %arg3[%c0_24, %c0_25], %48 {strides = array<i32>} : memref<1x128xf32, #tpu.memory_space<vmem>>, vector<1x128xf32>,
    } else {
    }
    return
  }
  func.func @transform_0(%arg0: i32) -> (i32, i32) {
    %c0_i32 = arith.constant 0 : i32
    %c0_i32_0 = arith.constant 0 : i32
    return %arg0, %c0_i32 : i32, i32
  }
  func.func @transform_1(%arg0: i32) -> (i32, i32) {
    %c0_i32 = arith.constant 0 : i32
    %c0_i32_0 = arith.constant 0 : i32
    return %arg0, %c0_i32 : i32, i32
  }
  func.func @transform_2(%arg0: i32) -> (i32, i32) {
    %c0_i32 = arith.constant 0 : i32
    %c0_i32_0 = arith.constant 0 : i32
    %c0_i32_1 = arith.constant 0 : i32
    return %c0_i32, %c0_i32_0 : i32, i32
  }
}

</mosaic_0001>

<bundles_post_ra>
// kernel: tpu_custom_call.1
= control target key start
LH: loop header
LB: loop body
LE: loop exit
PB: predicated region body
PF: predicated region fallthrough
CT: control target
= control target key end

     0   :  { %7 = vsyncpa [#allocation4], 0  ;;  %s298_s0 = inlined_call_operand.hbm [shape: f32[16,128], index: 0, kind: input, shape index: {}]   ;;  %s299_s1 = inlined_call_operand.hbm [shape: f32[16,128], index: 1, kind: input, shape index: {}]   ;;  %s300_s2 = inlined_call_operand.hbm [shape: f32[1,128], index: 2, kind: output, shape index: {}]  }
   0x1   :  { %8 = vsyncpa [#allocation7], 0 }
   0x2   :  { %9 = vsyncpa [#allocation5], 0  ;;  %s229_s9 = smov [#allocation3]   ;;  %s157_s13 = scalar_lea.hbm %s298_s0, 256 }
   0x3   :  { %s15_s10 = sshll.u32 %s229_s9, 4  ;;  %p158_p0 = scmp.ne.s32.totalorder %s298_s0, %s157_s13  ;;  %s16_s10 = int_to_ptr.vmem [resolvable:$true] %s15_s10 }
   0x4   :  { %p161_p1 = scmp.lt.u32.totalorder %s157_s13, %s298_s0 }
   0x6   :  { %p163_p2 = pnand %p161_p1, %p158_p0 }
   0x8   :  { %166 = shalt.err (!%p163_p2)
}
   0x9   :  { %s167_s18 = scalar_lea.vmem %s16_s10, 256  ;;  %p172_p4 = scmp.lt.s32.totalorder %s16_s10, %s16_s10 }
   0xa   :  { %p168_p3 = scmp.ne.s32.totalorder %s16_s10, %s167_s18  ;;  %p173_p5 = scmp.lt.s32.totalorder %s167_s18, %s167_s18 }
   0xc   :  { %p174_p6 = por %p173_p5, %p172_p4 }
   0xe   :  { %p175_p7 = pnand %p174_p6, %p168_p3 }
  0x10   :  { %178 = shalt.err (!%p175_p7)
}
  0x11   :  { %s230_s19 = smov 128   ;;  %s231_s20 = smov 8  }
  0x12   :  { %21 = dma.hbm_to_vmem [thread:$0]  %s298_s0, 256, %s16_s10, [#allocation4], %s230_s19, %s230_s19, %s231_s20  }
  0x13   :  { %s232_s23 = smov [#allocation6]   ;;  %s179_s27 = scalar_lea.hbm %s299_s1, 256 }
  0x14   :  { %s27_s24 = sshll.u32 %s232_s23, 4  ;;  %p180_p8 = scmp.ne.s32.totalorder %s299_s1, %s179_s27  ;;  %s28_s24 = int_to_ptr.vmem [resolvable:$true] %s27_s24 }
  0x15   :  { %p183_p9 = scmp.lt.u32.totalorder %s179_s27, %s299_s1 }
  0x17   :  { %p185_p10 = pnand %p183_p9, %p180_p8 }
  0x19   :  { %188 = shalt.err (!%p185_p10)
}
  0x1a   :  { %s189_s4 = scalar_lea.vmem %s28_s24, 256  ;;  %p194_p12 = scmp.lt.s32.totalorder %s28_s24, %s28_s24 }
  0x1b   :  { %p190_p11 = scmp.ne.s32.totalorder %s28_s24, %s189_s4  ;;  %p195_p13 = scmp.lt.s32.totalorder %s189_s4, %s189_s4 }
  0x1d   :  { %p196_p0 = por %p195_p13, %p194_p12 }
  0x1f   :  { %p197_p1 = pnand %p196_p0, %p190_p11 }
  0x21   :  { %200 = shalt.err (!%p197_p1)
}
  0x22   :  { %33 = dma.hbm_to_vmem [thread:$0]  %s299_s1, 256, %s28_s24, [#allocation7], %s230_s19, %s230_s19, %s231_s20  }
  0x23   :  { %223 = dma.done.wait [#allocation4], 256  }
  0x24   :  { %224 = vsyncadd [#allocation4], 4294967040 }
  0x25   :  { %225 = dma.done.wait [#allocation7], 256  }
  0x26   :  { %226 = vsyncadd [#allocation7], 4294967040  ;;  %v45_v0 = vld [vmem:[#allocation3] sm:$0xff]  ;;  %v46_v1 = vld [vmem:[#allocation3 + $0x8] sm:$0xff]  ;;  %v233_v45 = vmov 0.2  }
  0x27   :  { %v49_v2 = vand.u32 2147483647, %v45_v0  ;;  %v50_v3 = vand.u32 2147483647, %v46_v1  ;;  %v47_v14 = vld [vmem:[#allocation6] sm:$0xff]  ;;  %vm83_vm0 = vcmp.ge.f32.partialorder %v45_v0, 0.0 }
  0x28   :  { %v48_v16 = vld [vmem:[#allocation6 + $0x8] sm:$0xff]  ;;  %vm84_vm1 = vcmp.ge.f32.partialorder %v46_v1, 0.0  ;;  %v57_v21 = vmax.f32 %v45_v0, 0.0  ;;  %v58_v22 = vmax.f32 %v46_v1, 0.0  ;;  %v59_v23 = vmul.f32 %v47_v14, %v45_v0  ;;  %s234_s1 = smov [#allocation8]  }
  0x29   :  { %v51_v4 = vsub.f32 0.0, %v49_v2  ;;  %v52_v5 = vsub.f32 0.0, %v50_v3  ;;  %v60_v26 = vmul.f32 %v48_v16, %v46_v1  ;;  %vm93_vm4 = vcmp.eq.f32.partialorder %v47_v14, 0.0  ;;  %s129_s6 = sshll.u32 %s234_s1, 4  ;;  %s130_s6 = int_to_ptr.vmem [resolvable:$true] %s129_s6 }
  0x2a   :  { %v61_v37 = vsub.f32 %v57_v21, %v59_v23  ;;  %vm94_vm5 = vcmp.eq.f32.partialorder %v48_v16, 0.0  ;;  %v101_v46 = vsel %vm93_vm4, 0.8, %v233_v45  ;;  %s201_s7 = scalar_lea.vmem %s130_s6, 16  ;;  %s205_s8 = scalar_lea.vmem %s130_s6, 32 }
  0x2b   :  { %v53_v6 = vmul.f32 1.442695, %v51_v4  ;;  %v55_v7 = vmul.f32 1.442695, %v52_v5  ;;  %v62_v39 = vsub.f32 %v58_v22, %v60_v26  ;;  %v102_v50 = vsel %vm94_vm5, 0.8, %v233_v45  ;;  %p202_p2 = scmp.ne.s32.totalorder %s130_s6, %s201_s7  ;;  %p206_p3 = scmp.lt.s32.totalorder %s130_s6, %s130_s6 }
  0x2c   :  { %p207_p4 = scmp.lt.s32.totalorder %s205_s8, %s201_s7 }
  0x2d   :  { %145 = vpow2.f32 %v53_v6 }
  0x2e   :  { %147 = vpow2.f32 %v55_v7  ;;  %p208_p5 = por %p207_p4, %p206_p3 }
  0x30   :  { %p209_p6 = pnand %p208_p5, %p202_p2 }
  0x37   :  { %v146_v8 = vpop.eup %145 }
  0x38   :  { %v148_v9 = vpop.eup %147  ;;  %v63_v10 = vadd.f32 1.0, %v146_v8  ;;  %v66_v12 = vmul.f32 -0.5, %v146_v8  ;;  %v69_v17 = vand.u32 2147483647, %v146_v8  ;;  %v85_v24 = vsel %vm83_vm0, 1.0, %v146_v8 }
  0x39   :  { %v72_v11 = vadd.f32 1.0, %v148_v9  ;;  %v75_v13 = vmul.f32 -0.5, %v148_v9  ;;  %v78_v19 = vand.u32 2147483647, %v148_v9  ;;  %v86_v29 = vsel %vm84_vm1, 1.0, %v148_v9 }
  0x3a   :  { %149 = vlog2.f32 %v63_v10  ;;  %v67_v15 = vadd.f32 1.0, %v66_v12  ;;  %vm274_vm2 = vcmp.lt.f32.partialorder %v69_v17, 0.0004427343 }
  0x3b   :  { %151 = vlog2.f32 %v72_v11  ;;  %v76_v18 = vadd.f32 1.0, %v75_v13  ;;  %vm278_vm3 = vcmp.lt.f32.partialorder %v78_v19, 0.0004427343 }
  0x3c   :  { %153 = vrcp.f32 %v63_v10  ;;  %v68_v28 = vmul.f32 %v146_v8, %v67_v15 }
  0x3d   :  { %155 = vrcp.f32 %v72_v11  ;;  %v77_v33 = vmul.f32 %v148_v9, %v76_v18 }
  0x44   :  { %v150_v20 = vpop.eup %149 }
  0x45   :  { %v152_v25 = vpop.eup %151  ;;  %v65_v27 = vmul.f32 0.6931472, %v150_v20 }
  0x46   :  { %v154_v30 = vpop.eup %153  ;;  %v74_v32 = vmul.f32 0.6931472, %v152_v25 }
  0x47   :  { %v156_v34 = vpop.eup %155  ;;  %v91_v36 = vmul.f32 %v154_v30, %v85_v24  ;;  %v71_v40 = vsel %vm274_vm2, %v68_v28, %v65_v27 }
  0x48   :  { %v92_v38 = vmul.f32 %v156_v34, %v86_v29  ;;  %v80_v42 = vsel %vm278_vm3, %v77_v33, %v74_v32  ;;  %v81_v47 = vadd.f32 %v71_v40, %v61_v37 }
  0x49   :  { %v95_v41 = vsub.f32 1.0, %v91_v36  ;;  %v82_v51 = vadd.f32 %v80_v42, %v62_v39 }
  0x4a   :  { %v96_v43 = vsub.f32 1.0, %v92_v38 }
  0x4b   :  { %v97_v44 = vsel %vm93_vm4, %v91_v36, %v95_v41 }
  0x4c   :  { %v98_v48 = vsel %vm94_vm5, %v92_v38, %v96_v43  ;;  %v99_v49 = vmul.f32 %v97_v44, %v97_v44 }
  0x4d   :  { %v100_v52 = vmul.f32 %v98_v48, %v98_v48 }
  0x4e   :  { %v103_v53 = vmul.f32 %v101_v46, %v99_v49 }
  0x4f   :  { %v104_v54 = vmul.f32 %v102_v50, %v100_v52 }
  0x50   :  { %v105_v55 = vmul.f32 %v103_v53, %v81_v47 }
  0x51   :  { %v106_v56 = vmul.f32 %v104_v54, %v82_v51 }
  0x53   :  { %v108_v57 = vadd.f32 %v106_v56, %v105_v55 }
  0x55   :  { %v115_v58 = vrot.slane %v108_v57, 4 }
  0x57   :  { %v116_v59 = vadd.f32 %v115_v58, %v108_v57 }
  0x59   :  { %v117_v60 = vrot.slane %v116_v59, 2 }
  0x5b   :  { %v118_v61 = vadd.f32 %v117_v60, %v116_v59 }
  0x5d   :  { %v119_v62 = vrot.slane %v118_v61, 1 }
  0x5f   :  { %v120_v63 = vadd.f32 %v119_v62, %v118_v61 }
  0x61   :  { %v121_v0 = vmul.f32 0.00048828125, %v120_v63 }
  0x63   :  { %122 = vst [vmem:[#allocation8] sm:$0x1] %v121_v0 }
  0x64   :  { %212 = shalt.err (!%p209_p6)
}
  0x65   :  { %s213_s11 = scalar_lea.hbm %s300_s2, 16 }
  0x66   :  { %p214_p7 = scmp.ne.s32.totalorder %s300_s2, %s213_s11  ;;  %p217_p8 = scmp.lt.u32.totalorder %s213_s11, %s300_s2 }
  0x68   :  { %p219_p9 = pnand %p217_p8, %p214_p7 }
  0x6a   :  { %222 = shalt.err (!%p219_p9)
}
  0x6b   :  { %132 = dma.vmem_to_hbm [thread:$0]  %s130_s6, 16, %s300_s2, [#allocation5]  }
  0x6c   :  { %227 = dma.done.wait [#allocation5], 16  }
  0x6d   :  { %228 = vsyncadd [#allocation5], 4294967280 }
  0x6e   :  { %136 = vsyncpa [#allocation4], 1 }
  0x6f   :  { %137 = vsyncpa [#allocation7], 1 }
  0x70   :  { %138 = vsyncpa [#allocation5], 1 }

</bundles_post_ra>
